<compile_context>
chip_gen: v5e
topology: v5e:2x2
jax: 0.10.0
libtpu: 0.0.40
codegen_flags: <defaults>
</compile_context>

<pallas_src>
import jax
import jax.numpy as jnp
from jax.experimental import pallas as pl
from jax.experimental.pallas import tpu as pltpu

_LANE = 128


def _pick_spatial_block(C, HW, itemsize, target_bytes=1 << 20, max_lanes=4096):
    """Lane extent per spatial tile: multiple of 128, ~1 MiB per block."""
    hw_pad = -(-HW // _LANE) * _LANE
    lanes = (target_bytes // max(1, C * itemsize)) // _LANE * _LANE
    lanes = max(_LANE, min(lanes, hw_pad, max_lanes))
    return int(lanes)


def _make_kernel(C, HW, thw_blk, n_k):
    n_chunks = thw_blk // _LANE
    needs_mask = (HW % thw_blk) != 0   # only the generic / ragged case pays for masking
    inv_hw = 1.0 / float(HW)

    def kernel(x_ref, w1_ref, w2_ref, o_ref, sum_acc, max_acc):
        # x_ref : (C, thw_blk)   one spatial tile of one batch element
        # w1_ref: (hidden, C)    Conv2d(C, hidden, 1).weight squeezed
        # w2_ref: (C, hidden)    Conv2d(hidden, C, 1).weight squeezed
        # o_ref : (C, 1)
        # sum_acc / max_acc: (C, 128) f32 running partial reductions
        k = pl.program_id(1)

        @pl.when(k == 0)
        def _init():
            sum_acc[...] = jnp.zeros_like(sum_acc)
            max_acc[...] = jnp.full(max_acc.shape, -jnp.inf, dtype=max_acc.dtype)

        # --- hot loop: element-wise (VPU-only) accumulation per 128-lane chunk
        for j in range(n_chunks):
            chunk = x_ref[:, pl.ds(j * _LANE, _LANE)].astype(jnp.float32)   # (C, 128)
            if needs_mask:
                lane = jax.lax.broadcasted_iota(jnp.int32, (C, _LANE), 1)
                valid = (k * thw_blk + j * _LANE + lane) < HW
                sum_acc[...] += jnp.where(valid, chunk, 0.0)
                max_acc[...] = jnp.maximum(max_acc[...],
                                           jnp.where(valid, chunk, -jnp.inf))
            else:
                sum_acc[...] += chunk
                max_acc[...] = jnp.maximum(max_acc[...], chunk)

        # --- epilogue: one XLU reduce + tiny MLP + sigmoid + store
        @pl.when(k == n_k - 1)
        def _finalize():
            mean = jnp.sum(sum_acc[...], axis=-1, keepdims=True) * inv_hw    # (C, 1)
            mx = jnp.max(max_acc[...], axis=-1, keepdims=True)               # (C, 1)
            w1 = w1_ref[...]                                                  # (hidden, C)
            w2 = w2_ref[...]                                                  # (C, hidden)

            def mlp(p):                                                       # (C,1) -> (C,1)
                h = jnp.dot(w1, p, preferred_element_type=jnp.float32)        # (hidden, 1)
                h = jnp.maximum(h, 0.0)
                return jnp.dot(w2, h, preferred_element_type=jnp.float32)     # (C, 1)

            att = jax.nn.sigmoid(mlp(mean) + mlp(mx))                         # (C, 1)
            o_ref[...] = att.astype(o_ref.dtype)

    return kernel


def channel_attention(x_nchw, w1, w2):
    """x_nchw: (B, C, H, W); w1: (hidden, C); w2: (C, hidden).
    Returns sigmoid channel attention of shape (B, C, 1, 1)."""
    B, C, H, W = x_nchw.shape
    hidden = w1.shape[0]
    HW = H * W

    x = x_nchw.reshape(B, C, HW)                 # free reshape of contiguous NCHW
    thw_blk = _pick_spatial_block(C, HW, x.dtype.itemsize)
    n_k = -(-HW // thw_blk)

    out = pl.pallas_call(
        _make_kernel(C, HW, thw_blk, n_k),
        out_shape=jax.ShapeDtypeStruct((B, C, 1), x_nchw.dtype),
        grid_spec=pltpu.PrefetchScalarGridSpec(
            num_scalar_prefetch=0,
            grid=(B, n_k),
            in_specs=[
                pl.BlockSpec((None, C, thw_blk), lambda b, k: (b, 0, k)),
                pl.BlockSpec((hidden, C), lambda b, k: (0, 0)),
                pl.BlockSpec((C, hidden), lambda b, k: (0, 0)),
            ],
            out_specs=pl.BlockSpec((None, C, 1), lambda b, k: (b, 0, 0)),
            scratch_shapes=[
                pltpu.VMEM((C, _LANE), jnp.float32),   # running sum
                pltpu.VMEM((C, _LANE), jnp.float32),   # running max
            ],
        ),
        compiler_params=pltpu.CompilerParams(
            dimension_semantics=("parallel", "arbitrary")),
    )(x, w1, w2)

    return out.reshape(B, C, 1, 1)


def channel_attention_ref(x_nchw, w1, w2):
    """Pure-JAX reference matching the PyTorch module."""
    avg = jnp.mean(x_nchw, axis=(2, 3))          # (B, C)
    mx = jnp.max(x_nchw, axis=(2, 3))            # (B, C)

    def mlp(p):
        h = jnp.maximum(p @ w1.T, 0.0)           # (B, hidden)
        return h @ w2.T                          # (B, C)

    out = jax.nn.sigmoid(mlp(avg) + mlp(mx))
    return out.reshape(*out.shape, 1, 1)


if __name__ == "__main__":
    B, C, H, W = 2, 64, 16, 16
    ratio = 16
    hidden = C // ratio   # 4

    key = jax.random.PRNGKey(0)
    kx, k1, k2 = jax.random.split(key, 3)

    x = jax.random.normal(kx, (B, C, H, W), dtype=jnp.float32)
    # deterministic synthetic weights (Conv2d 1x1, no bias): shapes (out, in)
    w1 = jax.random.normal(k1, (hidden, C), dtype=jnp.float32) * (1.0 / jnp.sqrt(C))
    w2 = jax.random.normal(k2, (C, hidden), dtype=jnp.float32) * (1.0 / jnp.sqrt(hidden))

    out = jax.block_until_ready(channel_attention(x, w1, w2))
    ref = channel_attention_ref(x, w1, w2)

    assert out.shape == (B, C, 1, 1), out.shape
    assert jnp.allclose(out, ref, atol=1e-5, rtol=1e-5), float(
        jnp.max(jnp.abs(out - ref)))
    print("KERNEL_OK")
</pallas_src>

<mosaic_0001>
module attributes {stable_mosaic.version = 11 : i64} {
  func.func @kernel(%arg0: i32, %arg1: i32, %arg2: memref<1x64x256xf32, #tpu.memory_space<vmem>>, %arg3: memref<4x64xf32, #tpu.memory_space<vmem>>, %arg4: memref<64x4xf32, #tpu.memory_space<vmem>>, %arg5: memref<1x64x1xf32, #tpu.memory_space<vmem>>, %arg6: memref<64x128xf32, #tpu.memory_space<vmem>>, %arg7: memref<64x128xf32, #tpu.memory_space<vmem>>) attributes {dimension_semantics = [#tpu.dimension_semantics<parallel>, #tpu.dimension_semantics<arbitrary>], iteration_bounds = array<i64: 2, 1>, scalar_prefetch = 0 : i64, scratch_operands = 2 : i64, tpu.core_type = #tpu.core_type<tc>, window_params = [{transform_indices = @transform_0, window_bounds = array<i64: 1, 64, 256>}, {pipeline_mode = #tpu.pipeline_mode<synchronous>, transform_indices = @transform_1, window_bounds = array<i64: 4, 64>}, {pipeline_mode = #tpu.pipeline_mode<synchronous>, transform_indices = @transform_2, window_bounds = array<i64: 64, 4>}, {transform_indices = @transform_3, window_bounds = array<i64: 1, 64, 1>}]} {
    %c0_i32 = arith.constant 0 : i32
    %0 = arith.cmpi eq, %arg1, %c0_i32 : i32
    %1 = arith.extui %0 : i1 to i32
    %c0_i32_0 = arith.constant 0 : i32
    %2 = arith.cmpi ne, %1, %c0_i32_0 : i32
    scf.if %2 {
      %cst = arith.constant 0.000000e+00 : f32
      %22 = vector.broadcast %cst : f32 to vector<64x128xf32>
      %c0_23 = arith.constant 0 : index
      %c0_24 = arith.constant 0 : index
      %23 = vector.load %arg6[%c0_23, %c0_24] : memref<64x128xf32, #tpu.memory_space<vmem>>, vector<64x128xf32>
      tpu.vector_store %arg6[%c0_23, %c0_24], %22 {strides = array<i32>} : memref<64x128xf32, #tpu.memory_space<vmem>>, vector<64x128xf32>,
      %cst_25 = arith.constant 0xFF800000 : f32
      %24 = vector.broadcast %cst_25 : f32 to vector<64x128xf32>
      %c0_26 = arith.constant 0 : index
      %c0_27 = arith.constant 0 : index
      %25 = vector.load %arg7[%c0_26, %c0_27] : memref<64x128xf32, #tpu.memory_space<vmem>>, vector<64x128xf32>
      tpu.vector_store %arg7[%c0_26, %c0_27], %24 {strides = array<i32>} : memref<64x128xf32, #tpu.memory_space<vmem>>, vector<64x128xf32>,
    } else {
    }
    %c0 = arith.constant 0 : index
    %c0_1 = arith.constant 0 : index
    %c0_2 = arith.constant 0 : index
    %3 = vector.load %arg2[%c0, %c0_1, %c0_2] : memref<1x64x256xf32, #tpu.memory_space<vmem>>, vector<1x64x128xf32>
    %4 = vector.shape_cast %3 : vector<1x64x128xf32> to vector<64x128xf32>
    %c0_3 = arith.constant 0 : index
    %c0_4 = arith.constant 0 : index
    %5 = vector.load %arg6[%c0_3, %c0_4] : memref<64x128xf32, #tpu.memory_space<vmem>>, vector<64x128xf32>
    %6 = arith.addf %5, %4 : vector<64x128xf32>
    %c0_5 = arith.constant 0 : index
    %c0_6 = arith.constant 0 : index
    %7 = vector.load %arg6[%c0_5, %c0_6] : memref<64x128xf32, #tpu.memory_space<vmem>>, vector<64x128xf32>
    tpu.vector_store %arg6[%c0_5, %c0_6], %6 {strides = array<i32>} : memref<64x128xf32, #tpu.memory_space<vmem>>, vector<64x128xf32>,
    %c0_7 = arith.constant 0 : index
    %c0_8 = arith.constant 0 : index
    %8 = vector.load %arg7[%c0_7, %c0_8] : memref<64x128xf32, #tpu.memory_space<vmem>>, vector<64x128xf32>
    %9 = arith.maximumf %8, %4 : vector<64x128xf32>
    %c0_9 = arith.constant 0 : index
    %c0_10 = arith.constant 0 : index
    %10 = vector.load %arg7[%c0_9, %c0_10] : memref<64x128xf32, #tpu.memory_space<vmem>>, vector<64x128xf32>
    tpu.vector_store %arg7[%c0_9, %c0_10], %9 {strides = array<i32>} : memref<64x128xf32, #tpu.memory_space<vmem>>, vector<64x128xf32>,
    %c0_11 = arith.constant 0 : index
    %c0_12 = arith.constant 0 : index
    %c128 = arith.constant 128 : index
    %11 = vector.load %arg2[%c0_11, %c0_12, %c128] : memref<1x64x256xf32, #tpu.memory_space<vmem>>, vector<1x64x128xf32>
    %12 = vector.shape_cast %11 : vector<1x64x128xf32> to vector<64x128xf32>
    %c0_13 = arith.constant 0 : index
    %c0_14 = arith.constant 0 : index
    %13 = vector.load %arg6[%c0_13, %c0_14] : memref<64x128xf32, #tpu.memory_space<vmem>>, vector<64x128xf32>
    %14 = arith.addf %13, %12 : vector<64x128xf32>
    %c0_15 = arith.constant 0 : index
    %c0_16 = arith.constant 0 : index
    %15 = vector.load %arg6[%c0_15, %c0_16] : memref<64x128xf32, #tpu.memory_space<vmem>>, vector<64x128xf32>
    tpu.vector_store %arg6[%c0_15, %c0_16], %14 {strides = array<i32>} : memref<64x128xf32, #tpu.memory_space<vmem>>, vector<64x128xf32>,
    %c0_17 = arith.constant 0 : index
    %c0_18 = arith.constant 0 : index
    %16 = vector.load %arg7[%c0_17, %c0_18] : memref<64x128xf32, #tpu.memory_space<vmem>>, vector<64x128xf32>
    %17 = arith.maximumf %16, %12 : vector<64x128xf32>
    %c0_19 = arith.constant 0 : index
    %c0_20 = arith.constant 0 : index
    %18 = vector.load %arg7[%c0_19, %c0_20] : memref<64x128xf32, #tpu.memory_space<vmem>>, vector<64x128xf32>
    tpu.vector_store %arg7[%c0_19, %c0_20], %17 {strides = array<i32>} : memref<64x128xf32, #tpu.memory_space<vmem>>, vector<64x128xf32>,
    %c0_i32_21 = arith.constant 0 : i32
    %19 = arith.cmpi eq, %arg1, %c0_i32_21 : i32
    %20 = arith.extui %19 : i1 to i32
    %c0_i32_22 = arith.constant 0 : i32
    %21 = arith.cmpi ne, %20, %c0_i32_22 : i32
    scf.if %21 {
      %c0_23 = arith.constant 0 : index
      %c0_24 = arith.constant 0 : index
      %22 = vector.load %arg6[%c0_23, %c0_24] : memref<64x128xf32, #tpu.memory_space<vmem>>, vector<64x128xf32>
      %cst = arith.constant dense<0.000000e+00> : vector<64xf32>
      %23 = vector.multi_reduction <add>, %22, %cst [1] : vector<64x128xf32> to vector<64xf32>
      %24 = vector.shape_cast %23 : vector<64xf32> to vector<64x1xf32>
      %cst_25 = arith.constant 3.906250e-03 : f32
      %25 = vector.broadcast %cst_25 : f32 to vector<64x1xf32>
      %26 = arith.mulf %24, %25 : vector<64x1xf32>
      %c0_26 = arith.constant 0 : index
      %c0_27 = arith.constant 0 : index
      %27 = vector.load %arg7[%c0_26, %c0_27] : memref<64x128xf32, #tpu.memory_space<vmem>>, vector<64x128xf32>
      %cst_28 = arith.constant dense<0xFF800000> : vector<64xf32>
      %28 = vector.multi_reduction <maximumf>, %27, %cst_28 [1] : vector<64x128xf32> to vector<64xf32>
      %29 = vector.shape_cast %28 : vector<64xf32> to vector<64x1xf32>
      %c0_29 = arith.constant 0 : index
      %c0_30 = arith.constant 0 : index
      %30 = vector.load %arg3[%c0_29, %c0_30] : memref<4x64xf32, #tpu.memory_space<vmem>>, vector<4x64xf32>
      %c0_31 = arith.constant 0 : index
      %c0_32 = arith.constant 0 : index
      %31 = vector.load %arg4[%c0_31, %c0_32] : memref<64x4xf32, #tpu.memory_space<vmem>>, vector<64x4xf32>
      %cst_33 = arith.constant dense<0.000000e+00> : vector<4x1xf32>
      %32 = tpu.matmul %30, %26, %cst_33 {dimension_numbers = #tpu.dot_dimension_numbers<[1], [0], [0], [1], [0, 0, 1, 1], [], []>} : vector<4x64xf32>, vector<64x1xf32>, vector<4x1xf32> -> vector<4x1xf32>
      %cst_34 = arith.constant 0.000000e+00 : f32
      %33 = vector.broadcast %cst_34 : f32 to vector<4x1xf32>
      %34 = arith.maximumf %32, %33 : vector<4x1xf32>
      %cst_35 = arith.constant dense<0.000000e+00> : vector<64x1xf32>
      %35 = tpu.matmul %31, %34, %cst_35 {dimension_numbers = #tpu.dot_dimension_numbers<[1], [0], [0], [1], [0, 0, 1, 1], [], []>} : vector<64x4xf32>, vector<4x1xf32>, vector<64x1xf32> -> vector<64x1xf32>
      %cst_36 = arith.constant dense<0.000000e+00> : vector<4x1xf32>
      %36 = tpu.matmul %30, %29, %cst_36 {dimension_numbers = #tpu.dot_dimension_numbers<[1], [0], [0], [1], [0, 0, 1, 1], [], []>} : vector<4x64xf32>, vector<64x1xf32>, vector<4x1xf32> -> vector<4x1xf32>
      %cst_37 = arith.constant 0.000000e+00 : f32
      %37 = vector.broadcast %cst_37 : f32 to vector<4x1xf32>
      %38 = arith.maximumf %36, %37 : vector<4x1xf32>
      %cst_38 = arith.constant dense<0.000000e+00> : vector<64x1xf32>
      %39 = tpu.matmul %31, %38, %cst_38 {dimension_numbers = #tpu.dot_dimension_numbers<[1], [0], [0], [1], [0, 0, 1, 1], [], []>} : vector<64x4xf32>, vector<4x1xf32>, vector<64x1xf32> -> vector<64x1xf32>
      %40 = arith.addf %35, %39 : vector<64x1xf32>
      %41 = arith.negf %40 : vector<64x1xf32>
      %42 = math.exp %41 : vector<64x1xf32>
      %cst_39 = arith.constant 1.000000e+00 : f32
      %43 = vector.broadcast %cst_39 : f32 to vector<64x1xf32>
      %44 = arith.addf %43, %42 : vector<64x1xf32>
      %45 = arith.divf %43, %44 : vector<64x1xf32>
      %c0_40 = arith.constant 0 : index
      %c0_41 = arith.constant 0 : index
      %c0_42 = arith.constant 0 : index
      %46 = vector.load %arg5[%c0_40, %c0_41, %c0_42] : memref<1x64x1xf32, #tpu.memory_space<vmem>>, vector<1x64x1xf32>
      %47 = vector.shape_cast %46 : vector<1x64x1xf32> to vector<64x1xf32>
      %48 = vector.shape_cast %45 : vector<64x1xf32> to vector<1x64x1xf32>
      tpu.vector_store %arg5[%c0_40, %c0_41, %c0_42], %48 {strides = array<i32>} : memref<1x64x1xf32, #tpu.memory_space<vmem>>, vector<1x64x1xf32>,
    } else {
    }
    return
  }
  func.func @transform_0(%arg0: i32, %arg1: i32) -> (i32, i32, i32) {
    %c0_i32 = arith.constant 0 : i32
    %c0_i32_0 = arith.constant 0 : i32
    return %arg0, %c0_i32, %arg1 : i32, i32, i32
  }
  func.func @transform_1(%arg0: i32, %arg1: i32) -> (i32, i32) {
    %c0_i32 = arith.constant 0 : i32
    %c0_i32_0 = arith.constant 0 : i32
    %c0_i32_1 = arith.constant 0 : i32
    return %c0_i32, %c0_i32_0 : i32, i32
  }
  func.func @transform_2(%arg0: i32, %arg1: i32) -> (i32, i32) {
    %c0_i32 = arith.constant 0 : i32
    %c0_i32_0 = arith.constant 0 : i32
    %c0_i32_1 = arith.constant 0 : i32
    return %c0_i32, %c0_i32_0 : i32, i32
  }
  func.func @transform_3(%arg0: i32, %arg1: i32) -> (i32, i32, i32) {
    %c0_i32 = arith.constant 0 : i32
    %c0_i32_0 = arith.constant 0 : i32
    %c0_i32_1 = arith.constant 0 : i32
    return %arg0, %c0_i32, %c0_i32_0 : i32, i32, i32
  }
}

</mosaic_0001>

<bundles_post_ra>
// kernel: tpu_custom_call.1
= control target key start
LH: loop header
LB: loop body
LE: loop exit
PB: predicated region body
PF: predicated region fallthrough
CT: control target
= control target key end

     0   :  { %8 = vsyncpa [#allocation5], 0  ;;  %s1247_s0 = inlined_call_operand.hbm [shape: f32[2,64,256], index: 0, kind: input, shape index: {}]   ;;  %s1248_s1 = inlined_call_operand.vmem [shape: f32[4,64], index: 1, kind: input, shape index: {}]   ;;  %s1249_s2 = inlined_call_operand.vmem [shape: f32[64,4], index: 2, kind: input, shape index: {}]   ;;  %s1250_s3 = inlined_call_operand.vmem [shape: f32[2,64,1], index: 3, kind: output, shape index: {}]  }
   0x1   :  { %10 = vsyncpa [#allocation5 + $0x1], 0  ;;  %s1047_s12 = smov 0   ;;  %s1049_s13 = smov 0  }
   0x2   :  { %s1051_s14 = smov 0   ;;  %s1053_s15 = smov 0  }
   0x3   :  { %s1055_s16 = smov 0   ;;  %s1057_s17 = smov 0  }
   0x4 LB: > { %s809_s18 = sadd.s32 4294967295, %s1023_s17   ;;  %s28_s19 = sadd.s32 1, %s1019_s16  ;;  %s1023_s17 = sphi %s1057_s17, %s16_s17   ;;  %s1019_s16 = sphi %s1055_s16, %s1265_s16   ;;  %s1015_s15 = sphi %s1053_s15, %s1264_s15   ;;  %s1011_s14 = sphi %s1051_s14, %s1263_s14   ;;  %s1007_s13 = sphi %s1049_s13, %s1262_s13   ;;  %s1003_s12 = sphi %s1047_s12, %s1261_s12  }
   0x5   : > { %p30_p0 = scmp.ge.s32.totalorder %s28_s19, 2  ;;  %s37_s20 = sadd.s32 1, %s1011_s14 }
   0x6   : > { %p44_p1 = scmp.ne.s32.totalorder %s1011_s14, %s1007_s13  ;;  %p45_p2 = scmp.eq.s32.totalorder %s1023_s17, 0 }
   0x7   : > { %s1267_s19 = smov (%p30_p0, %s28_s19), 0  ;;  %p50_p4 = scmp.ne.s32.totalorder %s1007_s13, %s1003_s12 }
   0x8   : > { %p1083_p3 = por %p45_p2, %p44_p1  ;;  %s32_s22 = ssub.s32 %s1019_s16, %s1267_s19 }
   0x9   : > { %p51_p5 = scmp.eq.s32.totalorder %s809_s18, 0  ;;  %p35_p6 = scmp.eq.s32.totalorder %s32_s22, 0 }
   0xa   : > { %p860_p8 = scmp.lt.s32.totalorder %s1023_s17, 2  ;;  %s148_s25 = sand.u32 1, %s1011_s14  }
   0xb   : > { %p1090_p7 = por %p51_p5, %p50_p4  ;;  %s850_s26 = sshll.u32 %s1019_s16, 7 }
   0xc   : > { %s1096_s24 = scalar_select %p35_p6, %s1011_s14, %s37_s20  }
   0xd   : > { %s813_s27 = sshll.u32 %s148_s25, 7  ;;  %s159_s30 = scalar_lea.hbm %s1247_s0, %s850_s26 }
   0xe   : > { %s160_s4 = sshll.u32 %s159_s30, 4  ;;  %s152_s5 = scalar_lea.vmem [#allocation4], %s813_s27  ;;  %s161_s4 = int_to_ptr.hbm [resolvable:$true] %s160_s4 }
   0xf   : > { %s162_s6 = sshll.u32 %s152_s5, 4  ;;  %p857_p9 = pnand %p860_p8, %p1083_p3  ;;  %s163_s6 = int_to_ptr.vmem [resolvable:$true] %s162_s6 }
  0x10   : > { %p816_p10 = scmp.ge.s32.totalorder %s1023_s17, 1  ;;  %p170_p11 = scmp.lt.s32.totalorder %s1023_s17, 3 }
  0x11   : > { %s149_s7 = scalar_lea.sflag [#allocation5], %s148_s25  ;;  %s1025_s8 = smov 256  }
  0x12   : > { %s1026_s9 = smov 16   ;;  %p171_p12 = pnand %p816_p10, %p170_p11 }
  0x13   : > { %859 = dma.hbm_to_vmem [thread:$0]  (!%p857_p9), %s161_s4, 2048, %s163_s6, %s149_s7, %s1025_s8, %s1025_s8, %s1026_s9  }
  0x14   : > { %174 = sbr.rel (%p171_p12) target bundleno = 518 (0x206), region = 32  ;;  %s176_s10 = sand.u32 (!%p171_p12), 1, %s1007_s13  }
  0x15   : > { %s817_s11 = sshll.u32 (!%p171_p12), %s176_s10, 7  ;;  %s177_s12 = scalar_lea.sflag (!%p171_p12), [#allocation5], %s176_s10 }
  0x16   : > { %s1108_s18 = scalar_lea.vmem (!%p171_p12), [#allocation4], %s817_s11 }
  0x19   : > { %998 = dma.done.wait (%p1090_p7), %s177_s12, 2048  }
  0x1a   : > { %1000 = vsyncadd (%p1090_p7), %s177_s12, 4294965248  ;;  %v237_v0 = vld [vmem:[%s1108_s18 + $0x70] sm:$0xff]  ;;  %v293_v1 = vld [vmem:[%s1108_s18 + $0x78] sm:$0xff]  ;;  %vm410_vm0 = vcmask 523264   ;;  %vm481_vm1 = vcmask 1043456   ;;  %vm456_vm2 = vcmask 31744  }
  0x1b   : > { %v236_v2 = vld [vmem:[%s1108_s18 + $0x60] sm:$0xff]  ;;  %v309_v3 = vadd.f32 %v293_v1, %v237_v0  ;;  %v333_v4 = vmax.f32 %v237_v0, %v293_v1  ;;  %v292_v5 = vld [vmem:[%s1108_s18 + $0x68] sm:$0xff]  ;;  %v235_v7 = vld [vmem:[%s1108_s18 + $0x50] sm:$0xff]  ;;  %p205_p13 = scmp.lt.s32.totalorder %s1015_s15, 1  ;;  %vm722_vm7 = vcmask 7168  }
  0x1c   : > { %v332_v6 = vmax.f32 %v236_v2, %v292_v5  ;;  %v291_v8 = vld [vmem:[%s1108_s18 + $0x58] sm:$0xff]  ;;  %v234_v9 = vld [vmem:[%s1108_s18 + $0x40] sm:$0xff]  ;;  %v290_v10 = vld [vmem:[%s1108_s18 + $0x48] sm:$0xff]  ;;  %v308_v11 = vadd.f32 %v292_v5, %v236_v2 }
  0x1d   : > { %367 = vadd.xlane.f32.xlu0 %v309_v3  ;;  %399 = vmax.xlane.f32.xlu1 %v333_v4  ;;  %v307_v12 = vadd.f32 %v291_v8, %v235_v7  ;;  %v306_v13 = vadd.f32 %v290_v10, %v234_v9  ;;  %v233_v14 = vld [vmem:[%s1108_s18 + $0x30] sm:$0xff]  ;;  %v289_v15 = vld [vmem:[%s1108_s18 + $0x38] sm:$0xff]  ;;  %v331_v16 = vmax.f32 %v235_v7, %v291_v8  ;;  %v232_v19 = vld [vmem:[%s1108_s18 + $0x20] sm:$0xff]  ;;  %s1269_s15 = smov (!%p205_p13, %s1015_s15), 1 }
  0x1e   : > { %397 = vmax.xlane.f32.xlu2 %v332_v6  ;;  %v305_v17 = vadd.f32 %v289_v15, %v233_v14  ;;  %v330_v18 = vmax.f32 %v234_v9, %v290_v10  ;;  %v288_v20 = vld [vmem:[%s1108_s18 + $0x28] sm:$0xff]  ;;  %v231_v21 = vld [vmem:[%s1108_s18 + $0x10] sm:$0xff]  ;;  %v287_v22 = vld [vmem:[%s1108_s18 + $0x18] sm:$0xff]  ;;  %v329_v24 = vmax.f32 %v233_v14, %v289_v15  ;;  %s851_s12 = sshll.u32 %s1269_s15, 6 }
  0x1f   : > { %v304_v23 = vadd.f32 %v288_v20, %v232_v19  ;;  %v303_v25 = vadd.f32 %v287_v22, %v231_v21  ;;  %v230_v26 = vld [vmem:[%s1108_s18] sm:$0xff]  ;;  %v286_v27 = vld [vmem:[%s1108_s18 + $0x8] sm:$0xff]  ;;  %v328_v28 = vmax.f32 %v232_v19, %v288_v20  ;;  %v327_v30 = vmax.f32 %v231_v21, %v287_v22  ;;  %v404_v59 = vld [vmem:[%s1249_s2 + $0x10] sm:$0xff]  ;;  %s1188_s21 = scalar_lea.vmem %s1250_s3, %s851_s12 }
  0x20   : > { %v302_v29 = vadd.f32 %v286_v27, %v230_v26  ;;  %v326_v31 = vmax.f32 %v230_v26, %v286_v27  ;;  %v401_v55 = vld [vmem:[%s1248_s1] sm:$0xf]  ;;  %v405_v63 = vld [vmem:[%s1249_s2 + $0x18] sm:$0xff]  ;;  %v403_v0 = vld [vmem:[%s1249_s2 + $0x8] sm:$0xff] }
  0x21   : > { %v402_v60 = vld [vmem:[%s1249_s2] sm:$0xff]  ;;  %v407_v2 = vld [vmem:[%s1249_s2 + $0x28] sm:$0xff]  ;;  %v408_v3 = vld [vmem:[%s1249_s2 + $0x30] sm:$0xff] }
  0x22   : > { %v406_v1 = vld [vmem:[%s1249_s2 + $0x20] sm:$0xff]  ;;  %v409_v4 = vld [vmem:[%s1249_s2 + $0x38] sm:$0xff] }
  0x25   : > { %365 = vadd.xlane.f32.xlu0 %v308_v11  ;;  %363 = vadd.xlane.f32.xlu1 %v307_v12 }
  0x26   : > { %361 = vadd.xlane.f32.xlu2 %v306_v13 }
  0x2d   : > { %395 = vmax.xlane.f32.xlu0 %v331_v16  ;;  %359 = vadd.xlane.f32.xlu1 %v305_v17 }
  0x2e   : > { %393 = vmax.xlane.f32.xlu2 %v330_v18 }
  0x35   : > { %357 = vadd.xlane.f32.xlu0 %v304_v23  ;;  %391 = vmax.xlane.f32.xlu1 %v329_v24 }
  0x36   : > { %355 = vadd.xlane.f32.xlu2 %v303_v25 }
  0x3d   : > { %389 = vmax.xlane.f32.xlu0 %v328_v28  ;;  %353 = vadd.xlane.f32.xlu1 %v302_v29 }
  0x3e   : > { %387 = vmax.xlane.f32.xlu2 %v327_v30 }
  0x45   : > { %385 = vmax.xlane.f32.xlu0 %v326_v31 }
  0x90   : > { %v368_v32 = vpop.xlane.xlu0 %367  ;;  %v400_v33 = vpop.xlane.xlu1 %399 }
  0x91   : > { %v376_v34 = vmul.f32 0.00390625, %v368_v32  ;;  %443 = vmatpush.msra.mxu1 %v400_v33  ;;  %v398_v35 = vpop.xlane.xlu2 %397 }
  0x93   : > { %422 = vmatpush.msra.mxu0 %v376_v34  ;;  %444 = vmatpush.msra.mxu1 %v398_v35 }
  0x98   : > { %v366_v36 = vpop.xlane.xlu0 %365  ;;  %v364_v37 = vpop.xlane.xlu1 %363 }
  0x99   : > { %v375_v38 = vmul.f32 0.00390625, %v366_v36  ;;  %v374_v39 = vmul.f32 0.00390625, %v364_v37  ;;  %v362_v40 = vpop.xlane.xlu2 %361 }
  0x9a   : > { %v373_v41 = vmul.f32 0.00390625, %v362_v40 }
  0x9b   : > { %423 = vmatpush.msra.mxu0 %v375_v38 }
  0x9d   : > { %424 = vmatpush.msra.mxu0 %v374_v39 }
  0x9f   : > { %425 = vmatpush.msra.mxu0 %v373_v41 }
  0xa0   : > { %v396_v42 = vpop.xlane.xlu0 %395  ;;  %v360_v43 = vpop.xlane.xlu1 %359 }
  0xa1   : > { %445 = vmatpush.msra.mxu1 %v396_v42  ;;  %v394_v44 = vpop.xlane.xlu2 %393  ;;  %v372_v45 = vmul.f32 0.00390625, %v360_v43 }
  0xa3   : > { %446 = vmatpush.msra.mxu1 %v394_v44  ;;  %426 = vmatpush.msra.mxu0 %v372_v45 }
  0xa8   : > { %v358_v46 = vpop.xlane.xlu0 %357  ;;  %v392_v47 = vpop.xlane.xlu1 %391 }
  0xa9   : > { %v371_v48 = vmul.f32 0.00390625, %v358_v46  ;;  %v356_v49 = vpop.xlane.xlu2 %355  ;;  %447 = vmatpush.msra.mxu1 %v392_v47 }
  0xaa   : > { %v370_v50 = vmul.f32 0.00390625, %v356_v49 }
  0xab   : > { %427 = vmatpush.msra.mxu0 %v371_v48 }
  0xad   : > { %428 = vmatpush.msra.mxu0 %v370_v50 }
  0xb0   : > { %v390_v51 = vpop.xlane.xlu0 %389  ;;  %v354_v52 = vpop.xlane.xlu1 %353 }
  0xb1   : > { %448 = vmatpush.msra.mxu1 %v390_v51  ;;  %v388_v53 = vpop.xlane.xlu2 %387  ;;  %v369_v54 = vmul.f32 0.00390625, %v354_v52 }
  0xb3   : > { %449 = vmatpush.msra.mxu1 %v388_v53  ;;  %429 = vmatpush.msra.mxu0 %v369_v54 }
  0xb4   : > { %820 = vmatmul.msk.f32.vlgmr.msra.gmra.mxu0 %vm410_vm0, %v401_v55 }
  0xb8   : > { %v386_v56 = vpop.xlane.xlu0 %385 }
  0xb9   : > { %450 = vmatpush.msra.mxu1 %v386_v56 }
  0xba   : > { %821 = vmatmul.msk.f32.vlgmr.msra.gmra.mxu1 %vm410_vm0, %v401_v55 }
 0x131   : > { %v431_v57 = vpop.f32.mrf.mxu0 }
 0x132   : > { %v434_v58 = vmax.f32 %v431_v57, 0.0 }
 0x134   : > { %831 = vmatpush.msk.msrb.mxu1 %vm481_vm1, %v434_v58  ;;  %853 = vmatpush.msk.msra.mxu3 %vm481_vm1, %v434_v58 }
 0x135   : > { %834 = vmatmul.msk.f32.vlgmr.msra.gmra.mxu3 %vm456_vm2, %v404_v59  ;;  %832 = vmatmul.msk.f32.vlgmr.msrb.gmra.mxu1 %vm456_vm2, %v402_v60 }
 0x137   : > { %v452_v61 = vpop.f32.mrf.mxu1 }
 0x138   : > { %v455_v62 = vmax.f32 %v452_v61, 0.0 }
 0x13a   : > { %822 = vmatpush.msk.msrb.mxu0 %vm481_vm1, %v455_v62  ;;  %852 = vmatpush.msk.msra.mxu2 %vm481_vm1, %v455_v62 }
 0x13b   : > { %825 = vmatmul.msk.f32.vlgmr.msra.gmra.mxu2 %vm456_vm2, %v404_v59  ;;  %823 = vmatmul.msk.f32.vlgmr.msrb.gmra.mxu0 %vm456_vm2, %v402_v60 }
 0x13d   : > { %835 = vmatmul.msk.f32.gmra.mxu3 %vm456_vm2, %v405_v63  ;;  %833 = vmatmul.msk.f32.gmra.mxu1 %vm456_vm2, %v403_v0 }
 0x143   : > { %826 = vmatmul.msk.f32.gmra.mxu2 %vm456_vm2, %v405_v63  ;;  %824 = vmatmul.msk.f32.gmra.mxu0 %vm456_vm2, %v403_v0 }
 0x145   : > { %836 = vmatmul.msk.f32.gmra.mxu3 %vm456_vm2, %v406_v1 }
 0x14b   : > { %827 = vmatmul.msk.f32.gmra.mxu2 %vm456_vm2, %v406_v1 }
 0x14d   : > { %837 = vmatmul.msk.f32.gmra.mxu3 %vm456_vm2, %v407_v2 }
 0x153   : > { %828 = vmatmul.msk.f32.gmra.mxu2 %vm456_vm2, %v407_v2 }
 0x155   : > { %838 = vmatmul.msk.f32.gmra.mxu3 %vm456_vm2, %v408_v3 }
 0x15b   : > { %829 = vmatmul.msk.f32.gmra.mxu2 %vm456_vm2, %v408_v3 }
 0x15d   : > { %839 = vmatmul.msk.f32.gmra.mxu3 %vm456_vm2, %v409_v4 }
 0x163   : > { %830 = vmatmul.msk.f32.gmra.mxu2 %vm456_vm2, %v409_v4 }
 0x1b2   : > { %v546_v5 = vpop.f32.mrf.mxu1 }
 0x1b8   : > { %v552_v6 = vpop.f32.mrf.mxu3  ;;  %v502_v7 = vpop.f32.mrf.mxu0 }
 0x1b9   : > { %v547_v8 = vadd.f32 %v546_v5, %v502_v7 }
 0x1ba   : > { %v549_v11 = vpop.f32.mrf.mxu1 }
 0x1bb   : > { %v840_v9 = vmul.f32 -1.442695, %v547_v8 }
 0x1bd   : > { %911 = vpow2.f32 %v840_v9 }
 0x1be   : > { %v508_v10 = vpop.f32.mrf.mxu2 }
 0x1bf   : > { %v553_v12 = vadd.f32 %v552_v6, %v508_v10 }
 0x1c0   : > { %v555_v13 = vpop.f32.mrf.mxu3  ;;  %v505_v14 = vpop.f32.mrf.mxu0 }
 0x1c1   : > { %v842_v15 = vmul.f32 -1.442695, %v553_v12  ;;  %v550_v16 = vadd.f32 %v549_v11, %v505_v14 }
 0x1c3   : > { %v912_v17 = vpop.eup %911  ;;  %913 = vpow2.f32 %v842_v15  ;;  %v841_v18 = vmul.f32 -1.442695, %v550_v16 }
 0x1c4   : > { %v594_v19 = vadd.f32 1.0, %v912_v17 }
 0x1c5   : > { %915 = vpow2.f32 %v841_v18 }
 0x1c6   : > { %v511_v20 = vpop.f32.mrf.mxu2  ;;  %917 = vrcp.f32 %v594_v19  ;;  %vm607_vm3 = vweird.f32 %v594_v19  ;;  %v613_v30 = vand.u32 2147483648, %v594_v19  ;;  %v611_v34 = vand.u32 2147483647, %v594_v19 }
 0x1c7   : > { %v556_v21 = vadd.f32 %v555_v13, %v511_v20 }
 0x1c8   : > { %v558_v22 = vpop.f32.mrf.mxu3  ;;  %v614_v42 = vor.u32 1.1754944e-38, %v613_v30  ;;  %vm612_vm6 = vcmp.eq.f32.partialorder %v611_v34, 8.507059e+37 }
 0x1c9   : > { %v914_v23 = vpop.eup %913  ;;  %v843_v24 = vmul.f32 -1.442695, %v556_v21 }
 0x1ca   : > { %v596_v25 = vadd.f32 1.0, %v914_v23 }
 0x1cb   : > { %v916_v26 = vpop.eup %915  ;;  %919 = vpow2.f32 %v843_v24 }
 0x1cc   : > { %v918_v27 = vpop.eup %917  ;;  %921 = vrcp.f32 %v596_v25  ;;  %v595_v31 = vadd.f32 1.0, %v916_v26  ;;  %v641_v45 = vand.u32 2147483647, %v596_v25  ;;  %v643_v47 = vand.u32 2147483648, %v596_v25 }
 0x1cd   : > { %v603_v28 = vmul.f32 %v918_v27, %v594_v19  ;;  %vm608_vm4 = vweird.f32 %v918_v27  ;;  %vm637_vm9 = vweird.f32 %v596_v25 }
 0x1ce   : > { %v514_v29 = vpop.f32.mrf.mxu2  ;;  %923 = vrcp.f32 %v595_v31  ;;  %vm1178_vm5 = vmor %vm607_vm3, %vm608_vm4  ;;  %vm1192_vm10 = vcmp.eq.f32.partialorder %v641_v45, 8.507059e+37  ;;  %v644_v58 = vor.u32 1.1754944e-38, %v643_v47  ;;  %vm622_vm12 = vweird.f32 %v595_v31 }
 0x1cf   : > { %v559_v32 = vadd.f32 %v558_v22, %v514_v29  ;;  %v604_v33 = vsub.f32 1.0, %v603_v28  ;;  %v626_v63 = vand.u32 2147483647, %v595_v31  ;;  %v628_v0 = vand.u32 2147483648, %v595_v31 }
 0x1d0   : > { %v561_v35 = vpop.f32.mrf.mxu3 }
 0x1d1   : > { %v920_v36 = vpop.eup %919  ;;  %v844_v37 = vmul.f32 -1.442695, %v559_v32  ;;  %v605_v38 = vmul.f32 %v918_v27, %v604_v33  ;;  %vm1208_vm15 = vcmp.eq.f32.partialorder %v626_v63, 8.507059e+37  ;;  %v629_v11 = vor.u32 1.1754944e-38, %v628_v0 }
 0x1d2   : > { %v922_v39 = vpop.eup %921  ;;  %v1175_v40 = vadd.f32 1.0, %v920_v36 }
 0x1d3   : > { %v633_v43 = vmul.f32 %v922_v39, %v596_v25  ;;  %925 = vpow2.f32 %v844_v37  ;;  %v606_v44 = vadd.f32 %v918_v27, %v605_v38  ;;  %vm638_vm8 = vweird.f32 %v922_v39 }
 0x1d4   : > { %927 = vrcp.f32 %v1175_v40  ;;  %v924_v49 = vpop.eup %923  ;;  %vm639_vm11 = vmor %vm637_vm9, %vm638_vm8  ;;  %v656_v7 = vand.u32 2147483647, %v1175_v40  ;;  %v658_v8 = vand.u32 2147483648, %v1175_v40  ;;  %vm652_vm1 = vweird.f32 %v1175_v40 }
 0x1d5   : > { %v634_v46 = vsub.f32 1.0, %v633_v43  ;;  %v610_v48 = vsel %vm1178_vm5, %v918_v27, %v606_v44  ;;  %v618_v54 = vmul.f32 %v924_v49, %v595_v31  ;;  %vm623_vm13 = vweird.f32 %v924_v49 }
 0x1d6   : > { %v615_v50 = vsel %vm612_vm6, %v614_v42, %v610_v48  ;;  %v517_v51 = vpop.f32.mrf.mxu2  ;;  %vm1204_vm14 = vmor %vm622_vm12, %vm623_vm13  ;;  %v659_v21 = vor.u32 1.1754944e-38, %v658_v8  ;;  %vm657_vm3 = vcmp.eq.f32.partialorder %v656_v7, 8.507059e+37 }
 0x1d7   : > { %v635_v52 = vmul.f32 %v922_v39, %v634_v46  ;;  %723 = vst.msk [vmem:[%s1188_s21] sm:$0xff] %vm722_vm7, %v615_v50  ;;  %v562_v53 = vadd.f32 %v561_v35, %v517_v51  ;;  %v619_v60 = vsub.f32 1.0, %v618_v54 }
 0x1d8   : > { %v564_v1 = vpop.f32.mrf.mxu3 }
 0x1d9   : > { %v926_v56 = vpop.eup %925  ;;  %v636_v57 = vadd.f32 %v922_v39, %v635_v52  ;;  %v845_v59 = vmul.f32 -1.442695, %v562_v53  ;;  %v620_v6 = vmul.f32 %v924_v49, %v619_v60 }
 0x1da   : > { %v928_v61 = vpop.eup %927  ;;  %v598_v62 = vadd.f32 1.0, %v926_v56 }
 0x1db   : > { %v640_v2 = vsel %vm639_vm11, %v922_v39, %v636_v57  ;;  %v648_v3 = vmul.f32 %v928_v61, %v1175_v40  ;;  %929 = vpow2.f32 %v845_v59  ;;  %vm653_vm0 = vweird.f32 %v928_v61 }
 0x1dc   : > { %v645_v4 = vsel %vm1192_vm10, %v644_v58, %v640_v2  ;;  %931 = vrcp.f32 %v598_v62  ;;  %v621_v14 = vadd.f32 %v924_v49, %v620_v6  ;;  %vm654_vm2 = vmor %vm652_vm1, %vm653_vm0  ;;  %v673_v29 = vand.u32 2147483648, %v598_v62 }
 0x1dd   : > { %725 = vst.msk [vmem:[%s1188_s21 + $0x10] sm:$0xff] %vm722_vm7, %v645_v4  ;;  %v649_v5 = vsub.f32 1.0, %v648_v3  ;;  %v671_v32 = vand.u32 2147483647, %v598_v62  ;;  %vm667_vm5 = vweird.f32 %v598_v62 }
 0x1de   : > { %v520_v12 = vpop.f32.mrf.mxu2  ;;  %v625_v18 = vsel %vm1204_vm14, %v924_v49, %v621_v14  ;;  %v674_v38 = vor.u32 1.1754944e-38, %v673_v29 }
 0x1df   : > { %v650_v13 = vmul.f32 %v928_v61, %v649_v5  ;;  %v565_v15 = vadd.f32 %v564_v1, %v520_v12  ;;  %v630_v23 = vsel %vm1208_vm15, %v629_v11, %v625_v18  ;;  %vm672_vm8 = vcmp.eq.f32.partialorder %v671_v32, 8.507059e+37 }
 0x1e0   : > { %724 = vst.msk [vmem:[%s1188_s21 + $0x8] sm:$0xff] %vm722_vm7, %v630_v23  ;;  %v567_v27 = vpop.f32.mrf.mxu3 }
 0x1e1   : > { %v930_v16 = vpop.eup %929  ;;  %v651_v17 = vadd.f32 %v928_v61, %v650_v13  ;;  %v846_v19 = vmul.f32 -1.442695, %v565_v15 }
 0x1e2   : > { %v932_v20 = vpop.eup %931  ;;  %v599_v22 = vadd.f32 1.0, %v930_v16 }
 0x1e3   : > { %v655_v24 = vsel %vm654_vm2, %v928_v61, %v651_v17  ;;  %v663_v25 = vmul.f32 %v932_v20, %v598_v62  ;;  %933 = vpow2.f32 %v846_v19  ;;  %vm668_vm4 = vweird.f32 %v932_v20 }
 0x1e4   : > { %v660_v26 = vsel %vm657_vm3, %v659_v21, %v655_v24  ;;  %935 = vrcp.f32 %v599_v22  ;;  %vm669_vm6 = vmor %vm667_vm5, %vm668_vm4  ;;  %v688_v44 = vand.u32 2147483648, %v599_v22  ;;  %v686_v46 = vand.u32 2147483647, %v599_v22 }
 0x1e5   : > { %726 = vst.msk [vmem:[%s1188_s21 + $0x18] sm:$0xff] %vm722_vm7, %v660_v26  ;;  %v664_v28 = vsub.f32 1.0, %v663_v25  ;;  %vm682_vm10 = vweird.f32 %v599_v22 }
 0x1e6   : > { %v523_v30 = vpop.f32.mrf.mxu2  ;;  %v689_v50 = vor.u32 1.1754944e-38, %v688_v44  ;;  %vm687_vm12 = vcmp.eq.f32.partialorder %v686_v46, 8.507059e+37 }
 0x1e7   : > { %v665_v31 = vmul.f32 %v932_v20, %v664_v28  ;;  %v568_v33 = vadd.f32 %v567_v27, %v523_v30 }
 0x1e9   : > { %v934_v34 = vpop.eup %933  ;;  %v666_v35 = vadd.f32 %v932_v20, %v665_v31  ;;  %v847_v36 = vmul.f32 -1.442695, %v568_v33 }
 0x1ea   : > { %v936_v37 = vpop.eup %935  ;;  %v600_v39 = vadd.f32 1.0, %v934_v34 }
 0x1eb   : > { %v670_v40 = vsel %vm669_vm6, %v932_v20, %v666_v35  ;;  %v678_v41 = vmul.f32 %v936_v37, %v599_v22  ;;  %937 = vpow2.f32 %v847_v36  ;;  %vm683_vm9 = vweird.f32 %v936_v37 }
 0x1ec   : > { %v675_v42 = vsel %vm672_vm8, %v674_v38, %v670_v40  ;;  %939 = vrcp.f32 %v600_v39  ;;  %vm684_vm11 = vmor %vm682_vm10, %vm683_vm9  ;;  %v703_v56 = vand.u32 2147483648, %v600_v39  ;;  %v701_v58 = vand.u32 2147483647, %v600_v39 }
 0x1ed   : > { %727 = vst.msk [vmem:[%s1188_s21 + $0x20] sm:$0xff] %vm722_vm7, %v675_v42  ;;  %v679_v43 = vsub.f32 1.0, %v678_v41  ;;  %vm697_vm14 = vweird.f32 %v600_v39 }
 0x1ee   : > { %v704_v61 = vor.u32 1.1754944e-38, %v703_v56  ;;  %vm702_vm0 = vcmp.eq.f32.partialorder %v701_v58, 8.507059e+37 }
 0x1ef   : > { %v680_v45 = vmul.f32 %v936_v37, %v679_v43 }
 0x1f1   : > { %v938_v47 = vpop.eup %937  ;;  %v681_v48 = vadd.f32 %v936_v37, %v680_v45 }
 0x1f2   : > { %v940_v49 = vpop.eup %939  ;;  %v601_v51 = vadd.f32 1.0, %v938_v47 }
 0x1f3   : > { %v685_v52 = vsel %vm684_vm11, %v936_v37, %v681_v48  ;;  %v693_v53 = vmul.f32 %v940_v49, %v600_v39  ;;  %vm698_vm13 = vweird.f32 %v940_v49 }
 0x1f4   : > { %v690_v54 = vsel %vm687_vm12, %v689_v50, %v685_v52  ;;  %941 = vrcp.f32 %v601_v51  ;;  %vm699_vm15 = vmor %vm697_vm14, %vm698_vm13  ;;  %v718_v2 = vand.u32 2147483648, %v601_v51  ;;  %v716_v4 = vand.u32 2147483647, %v601_v51 }
 0x1f5   : > { %728 = vst.msk [vmem:[%s1188_s21 + $0x28] sm:$0xff] %vm722_vm7, %v690_v54  ;;  %v694_v55 = vsub.f32 1.0, %v693_v53  ;;  %vm712_vm2 = vweird.f32 %v601_v51 }
 0x1f6   : > { %v719_v6 = vor.u32 1.1754944e-38, %v718_v2  ;;  %vm717_vm4 = vcmp.eq.f32.partialorder %v716_v4, 8.507059e+37 }
 0x1f7   : > { %v695_v57 = vmul.f32 %v940_v49, %v694_v55 }
 0x1f9   : > { %v696_v59 = vadd.f32 %v940_v49, %v695_v57 }
 0x1fa   : > { %v942_v60 = vpop.eup %941 }
 0x1fb   : > { %v700_v62 = vsel %vm699_vm15, %v940_v49, %v696_v59  ;;  %v708_v63 = vmul.f32 %v942_v60, %v601_v51  ;;  %vm713_vm1 = vweird.f32 %v942_v60 }
 0x1fc   : > { %v705_v0 = vsel %vm702_vm0, %v704_v61, %v700_v62  ;;  %vm714_vm3 = vmor %vm712_vm2, %vm713_vm1 }
 0x1fd   : > { %729 = vst.msk [vmem:[%s1188_s21 + $0x30] sm:$0xff] %vm722_vm7, %v705_v0  ;;  %v709_v1 = vsub.f32 1.0, %v708_v63 }
 0x1ff   : > { %v710_v3 = vmul.f32 %v942_v60, %v709_v1 }
 0x201   : > { %v711_v5 = vadd.f32 %v942_v60, %v710_v3 }
 0x203   : > { %v715_v7 = vsel %vm714_vm3, %v942_v60, %v711_v5 }
 0x204   : > { %v720_v8 = vsel %vm717_vm4, %v719_v6, %v715_v7 }
 0x205   : > { %730 = vst.msk [vmem:[%s1188_s21 + $0x38] sm:$0xff] %vm722_vm7, %v720_v8 }
 0x206 PF: > { %s16_s17 = sadd.s32 1, %s1023_s17   ;;  %s1261_s12 = smov %s1007_s13 }
 0x207   : > { %p13_p0 = scmp.ge.s32.totalorder %s16_s17, 4   ;;  %s1262_s13 = smov %s1011_s14 }
 0x208   : > { %s1263_s14 = smov %s1096_s24  ;;  %s1264_s15 = smov %s1019_s16 }
 0x209   : > { %s1265_s16 = smov %s1267_s19  ;;  %15 = sbr.rel (!%p13_p0) target bundleno = 4 (0x4), region = 80 }
 0x20e   :  { %752 = vsyncpa [#allocation5], 1 }
 0x20f   :  { %754 = vsyncpa [#allocation5 + $0x1], 1 }

</bundles_post_ra>
